<compile_context>
chip_gen: v7x
topology: tpu7x:2x2x1
jax: 0.10.0
libtpu: 0.0.40
codegen_flags: <defaults>
</compile_context>

<pallas_src>
import functools

import jax
import jax.numpy as jnp
from jax.experimental import pallas as pl
from jax.experimental.pallas import tpu as pltpu

_EPS = 1e-6  # matches torch.nn.functional.pairwise_distance default eps


def _round_up(x: int, m: int) -> int:
    return ((x + m - 1) // m) * m


def _distance_loss_kernel(u_ref, v_ref, lbl_ref, out_ref, *,
                          n_valid: int, tile_rows: int, needs_mask: bool):
    # u_ref, v_ref: (tb, D) native dtype in VMEM ; lbl_ref: (tb, 1) f32 in VMEM
    # out_ref: (1, 8, 128) f32 per-tile partial-sum block (lane-dense, unmasked store)
    i = pl.program_id(0)

    # Cast to f32 in-kernel; inputs travel over HBM in their native dtype.
    u = u_ref[...].astype(jnp.float32)
    v = v_ref[...].astype(jnp.float32)
    diff = u - v + jnp.float32(_EPS)                           # VPU elementwise
    sq_sum = jnp.sum(diff * diff, axis=-1, keepdims=True)      # lane reduce -> (tb, 1)
    dist = jnp.sqrt(sq_sum)                                    # EUP
    err = dist - lbl_ref[...]                                  # (tb, 1)

    if needs_mask:
        # zero out rows that belong to batch padding (last ragged tile)
        row = i * tile_rows + jax.lax.broadcasted_iota(jnp.int32, err.shape, 0)
        err = jnp.where(row < n_valid, err, 0.0)

    partial = jnp.sum(err * err)                               # this tile's partial sum
    out_ref[...] = jnp.broadcast_to(partial, out_ref.shape).astype(jnp.float32)


def distance_loss(u: jax.Array, v: jax.Array, labels: jax.Array, *,
                  tile_rows=None,
                  vmem_limit_bytes: int = 48 * 1024 * 1024) -> jax.Array:
    """Euclidean DistanceLoss: mean((||u - v + eps||_2 - labels)^2). Returns scalar f32."""
    assert u.shape == v.shape and u.ndim == 2
    B, D = u.shape
    itemsize = jnp.dtype(u.dtype).itemsize
    sub_mult = max(8, 32 // itemsize)        # sublane packing: 8 f32, 16 bf16, 32 int8/fp8
    B_sub = _round_up(B, sub_mult)

    # Per-row VMEM cost of a batch tile:
    #   4 * D * itemsize : u, v double-buffered (pipeline) in native dtype
    #   12 * D           : in-kernel f32 temporaries (u, v, diff upcasts)
    #   ~2048            : lane-padded (tb,1) label buffers + sq_sum/dist columns
    bytes_per_row = D * (4 * itemsize + 12) + 2048
    budget = int(0.75 * vmem_limit_bytes)    # ~25% headroom for compiler scratch

    if tile_rows is not None:
        tb = _round_up(min(int(tile_rows), B_sub), sub_mult)
    else:
        tb_cap = (budget // bytes_per_row) // sub_mult * sub_mult
        if tb_cap < sub_mult:
            # Extremely large D: smallest legal tile; lift the scoped limit to fit.
            # TODO(synk): tile D with an in-kernel accumulator if this ever matters.
            tb = sub_mult
            vmem_limit_bytes = max(vmem_limit_bytes,
                                   int(tb * bytes_per_row / 0.75) + (1 << 20))
        else:
            tb = min(tb_cap, B_sub)
            # Prefer >=2 tiles when a single tile is already multi-MiB so both
            # v7x TensorCores get work under the "parallel" grid axis.
            if tb == B_sub and tb >= 2 * sub_mult and 2 * tb * D * itemsize >= (2 << 20):
                tb = _round_up(-(-B_sub // 2), sub_mult)

    Bp = _round_up(B, tb)
    if Bp != B:
        pad = Bp - B
        u = jnp.pad(u, ((0, pad), (0, 0)))
        v = jnp.pad(v, ((0, pad), (0, 0)))
    lbl = jnp.pad(labels.reshape(-1).astype(jnp.float32), (0, Bp - B)).reshape(Bp, 1)

    n_tiles = Bp // tb
    kernel = functools.partial(
        _distance_loss_kernel, n_valid=B, tile_rows=tb, needs_mask=(Bp != B))

    cost = pl.CostEstimate(
        flops=4 * B * D + 3 * B,
        transcendentals=B,
        bytes_accessed=2 * Bp * D * itemsize + 4 * Bp + n_tiles * 8 * 128 * 4,
    )

    partials = pl.pallas_call(
        kernel,
        out_shape=jax.ShapeDtypeStruct((n_tiles, 8, 128), jnp.float32),
        grid=(n_tiles,),
        in_specs=[
            pl.BlockSpec((tb, D), lambda i: (i, 0)),   # u (native dtype, full-D block)
            pl.BlockSpec((tb, D), lambda i: (i, 0)),   # v (native dtype, full-D block)
            pl.BlockSpec((tb, 1), lambda i: (i, 0)),   # labels column (f32)
        ],
        out_specs=pl.BlockSpec((1, 8, 128), lambda i: (i, 0, 0)),
        compiler_params=pltpu.CompilerParams(
            dimension_semantics=("parallel",),          # no carried state across tiles
            vmem_limit_bytes=vmem_limit_bytes,
        ),
        cost_estimate=cost,
    )(u, v, lbl)

    return jnp.sum(partials[:, 0, 0]) * jnp.float32(1.0 / B)


def _reference(u, v, labels):
    uf = u.astype(jnp.float32)
    vf = v.astype(jnp.float32)
    dist = jnp.sqrt(jnp.sum((uf - vf + _EPS) ** 2, axis=-1))
    return jnp.mean((dist - labels.reshape(-1).astype(jnp.float32)) ** 2)


if __name__ == "__main__":
    key = jax.random.PRNGKey(0)
    ku, kv, kl = jax.random.split(key, 3)

    # 1) small f32 case (single tile, no masking)
    B, D = 8, 32
    u = jax.random.normal(ku, (B, D), dtype=jnp.float32)
    v = jax.random.normal(kv, (B, D), dtype=jnp.float32)
    labels = jax.random.uniform(kl, (B,), dtype=jnp.float32) * 5.0
    loss = distance_loss(u, v, labels)
    jax.block_until_ready(loss)
    ref = _reference(u, v, labels)
    assert jnp.allclose(loss, ref, rtol=1e-5, atol=1e-5), (loss, ref)

    # 2) multi-tile "parallel" grid with a ragged (masked) last tile, f32
    B2, D2 = 300, 64
    u2 = jax.random.normal(ku, (B2, D2), dtype=jnp.float32)
    v2 = jax.random.normal(kv, (B2, D2), dtype=jnp.float32)
    l2 = jax.random.uniform(kl, (B2,), dtype=jnp.float32) * 5.0
    loss2 = distance_loss(u2, v2, l2, tile_rows=128)
    jax.block_until_ready(loss2)
    ref2 = _reference(u2, v2, l2)
    assert jnp.allclose(loss2, ref2, rtol=1e-5, atol=1e-5), (loss2, ref2)

    # 3) native bf16 embeddings (half the HBM traffic), auto tile sizing
    u3 = u2.astype(jnp.bfloat16)
    v3 = v2.astype(jnp.bfloat16)
    loss3 = distance_loss(u3, v3, l2)
    jax.block_until_ready(loss3)
    ref3 = _reference(u3, v3, l2)
    assert jnp.allclose(loss3, ref3, rtol=1e-3, atol=1e-3), (loss3, ref3)

    print("KERNEL_OK")
</pallas_src>

<mosaic_0001>
module attributes {stable_mosaic.version = 11 : i64} {
  func.func @_distance_loss_kernel(%arg0: i32, %arg1: memref<8x32xf32, #tpu.memory_space<vmem>>, %arg2: memref<8x32xf32, #tpu.memory_space<vmem>>, %arg3: memref<8x1xf32, #tpu.memory_space<vmem>>, %arg4: memref<1x8x128xf32, #tpu.memory_space<vmem>>) attributes {dimension_semantics = [#tpu.dimension_semantics<parallel>], iteration_bounds = array<i64: 1>, scalar_prefetch = 0 : i64, scratch_operands = 0 : i64, tpu.core_type = #tpu.core_type<tc>, window_params = [{transform_indices = @transform_0, window_bounds = array<i64: 8, 32>}, {transform_indices = @transform_1, window_bounds = array<i64: 8, 32>}, {transform_indices = @transform_2, window_bounds = array<i64: 8, 1>}, {transform_indices = @transform_3, window_bounds = array<i64: 1, 8, 128>}]} {
    %c0 = arith.constant 0 : index
    %c0_0 = arith.constant 0 : index
    %0 = vector.load %arg1[%c0, %c0_0] : memref<8x32xf32, #tpu.memory_space<vmem>>, vector<8x32xf32>
    %c0_1 = arith.constant 0 : index
    %c0_2 = arith.constant 0 : index
    %1 = vector.load %arg2[%c0_1, %c0_2] : memref<8x32xf32, #tpu.memory_space<vmem>>, vector<8x32xf32>
    %2 = arith.subf %0, %1 : vector<8x32xf32>
    %cst = arith.constant 9.99999997E-7 : f32
    %3 = vector.broadcast %cst : f32 to vector<8x32xf32>
    %4 = arith.addf %2, %3 : vector<8x32xf32>
    %5 = arith.mulf %4, %4 : vector<8x32xf32>
    %cst_3 = arith.constant dense<0.000000e+00> : vector<8xf32>
    %6 = vector.multi_reduction <add>, %5, %cst_3 [1] : vector<8x32xf32> to vector<8xf32>
    %7 = vector.shape_cast %6 : vector<8xf32> to vector<8x1xf32>
    %8 = math.sqrt %7 : vector<8x1xf32>
    %c0_4 = arith.constant 0 : index
    %c0_5 = arith.constant 0 : index
    %9 = vector.load %arg3[%c0_4, %c0_5] : memref<8x1xf32, #tpu.memory_space<vmem>>, vector<8x1xf32>
    %10 = arith.subf %8, %9 : vector<8x1xf32>
    %11 = arith.mulf %10, %10 : vector<8x1xf32>
    %12 = vector.shape_cast %11 : vector<8x1xf32> to vector<1x8x1xf32>
    %cst_6 = arith.constant dense<0.000000e+00> : vector<1xf32>
    %13 = vector.multi_reduction <add>, %12, %cst_6 [1, 2] : vector<1x8x1xf32> to vector<1xf32>
    %14 = vector.shape_cast %13 : vector<1xf32> to vector<1x1x1xf32>
    %15 = vector.extract %14[0, 0, 0] : f32 from vector<1x1x1xf32>
    %16 = vector.broadcast %15 : f32 to vector<1x8x128xf32>
    %c0_7 = arith.constant 0 : index
    %c0_8 = arith.constant 0 : index
    %c0_9 = arith.constant 0 : index
    %17 = vector.load %arg4[%c0_7, %c0_8, %c0_9] : memref<1x8x128xf32, #tpu.memory_space<vmem>>, vector<1x8x128xf32>
    tpu.vector_store %arg4[%c0_7, %c0_8, %c0_9], %16 {strides = array<i32>} : memref<1x8x128xf32, #tpu.memory_space<vmem>>, vector<1x8x128xf32>,
    return
  }
  func.func @transform_0(%arg0: i32) -> (i32, i32) {
    %c0_i32 = arith.constant 0 : i32
    %c0_i32_0 = arith.constant 0 : i32
    return %arg0, %c0_i32 : i32, i32
  }
  func.func @transform_1(%arg0: i32) -> (i32, i32) {
    %c0_i32 = arith.constant 0 : i32
    %c0_i32_0 = arith.constant 0 : i32
    return %arg0, %c0_i32 : i32, i32
  }
  func.func @transform_2(%arg0: i32) -> (i32, i32) {
    %c0_i32 = arith.constant 0 : i32
    %c0_i32_0 = arith.constant 0 : i32
    return %arg0, %c0_i32 : i32, i32
  }
  func.func @transform_3(%arg0: i32) -> (i32, i32, i32) {
    %c0_i32 = arith.constant 0 : i32
    %c0_i32_0 = arith.constant 0 : i32
    %c0_i32_1 = arith.constant 0 : i32
    return %arg0, %c0_i32, %c0_i32_0 : i32, i32, i32
  }
}

</mosaic_0001>

<bundles_post_ra>
// kernel: tpu_custom_call.1
= control target key start
LH: loop header
LB: loop body
LE: loop exit
PB: predicated region body
PF: predicated region fallthrough
CT: control target
= control target key end

     0   :  { %8 = vsyncpa [#allocation3], 0  ;;  %s180_s0 = inlined_call_operand.vmem [shape: f32[8,32], index: 0, kind: input, shape index: {}]   ;;  %s181_s1 = inlined_call_operand.hbm [shape: f32[8,32], index: 1, kind: input, shape index: {}]   ;;  %s182_s2 = inlined_call_operand.vmem [shape: f32[8,1], index: 2, kind: input, shape index: {}]   ;;  %s183_s3 = inlined_call_operand.hbm [shape: f32[1,8,128], index: 3, kind: output, shape index: {}]  }
   0x1   :  { %9 = vsyncpa [#allocation4], 0  ;;  %s128_s12 = smov [#allocation2]   ;;  %s80_s16 = scalar_lea.hbm %s181_s1, 128 }
   0x2   :  { %s18_s13 = sshll.u32 %s128_s12, 4  ;;  %p81_p0 = scmp.ne.s32.totalorder %s181_s1, %s80_s16  ;;  %s19_s13 = int_to_ptr.vmem [resolvable:$true] %s18_s13 }
   0x3   :  { %p84_p1 = scmp.lt.u32.totalorder %s80_s16, %s181_s1 }
   0x5   :  { %p86_p2 = pnand %p84_p1, %p81_p0 }
   0x7   :  { %89 = shalt.err (!%p86_p2)
}
   0x8   :  { %s90_s21 = scalar_lea.vmem %s19_s13, 128  ;;  %p95_p4 = scmp.lt.s32.totalorder %s19_s13, %s19_s13 }
   0x9   :  { %p91_p3 = scmp.ne.s32.totalorder %s19_s13, %s90_s21  ;;  %p96_p5 = scmp.lt.s32.totalorder %s90_s21, %s90_s21 }
   0xb   :  { %p97_p6 = por %p96_p5, %p95_p4 }
   0xd   :  { %p98_p7 = pnand %p97_p6, %p91_p3 }
   0xf   :  { %101 = shalt.err (!%p98_p7)
}
  0x10   :  { %21 = dma.hbm_to_vmem [thread:$0]  %s181_s1, 128, %s19_s13, [#allocation3]  }
  0x11   :  { %124 = dma.done.wait [#allocation3], 128  }
  0x12   :  { %125 = vsyncadd [#allocation3], 4294967168  ;;  %v27_v0 = vld [vmem:[%s180_s0] sm:$0xff]  ;;  %vm32_vm0 = vcmask 261120   ;;  %vm46_vm3 = vcmask 7168   ;;  %s129_s0 = smov [#allocation5]  }
  0x13   :  { %v28_v1 = vld [vmem:[#allocation2] sm:$0xff]  ;;  %s65_s27 = sshll.u32 %s129_s0, 4  ;;  %s66_s27 = int_to_ptr.vmem [resolvable:$true] %s65_s27 }
  0x14   :  { %v29_v2 = vsub.f32 %v27_v0, %v28_v1  ;;  %v43_v10 = vld [vmem:[%s182_s2] sm:$0xff]  ;;  %s102_s2 = scalar_lea.vmem %s66_s27, 128  ;;  %p107_p9 = scmp.lt.s32.totalorder %s66_s27, %s66_s27 }
  0x15   :  { %p103_p8 = scmp.ne.s32.totalorder %s66_s27, %s102_s2  ;;  %p108_p10 = scmp.lt.s32.totalorder %s102_s2, %s102_s2 }
  0x16   :  { %v30_v3 = vadd.f32 1e-06, %v29_v2 }
  0x17   :  { %p109_p11 = por %p108_p10, %p107_p9 }
  0x18   :  { %v31_v4 = vmul.f32 %v30_v3, %v30_v3 }
  0x19   :  { %p110_p12 = pnand %p109_p11, %p103_p8 }
  0x1a   :  { %v33_v5 = vsel %vm32_vm0, %v31_v4, 0.0 }
  0x1b   :  { %34 = vadd.xlane.f32.xlu0 %v33_v5 }
  0xa8   :  { %v35_v6 = vpop.xlane.xlu0 %34 }
  0xa9   :  { %78 = vrsqrt.f32 %v35_v6  ;;  %vm38_vm1 = vcmp.eq.f32.partialorder %v35_v6, inf  ;;  %v41_v9 = vand.u32 2147483648, %v35_v6  ;;  %vm40_vm2 = vcmp.eq.f32.partialorder %v35_v6, 0.0 }
  0xb3   :  { %v79_v7 = vpop.eup %78 }
  0xb4   :  { %v37_v8 = vmul.f32 %v79_v7, %v35_v6 }
  0xb6   :  { %v39_v11 = vsel %vm38_vm1, %v35_v6, %v37_v8 }
  0xb7   :  { %v42_v12 = vsel %vm40_vm2, %v41_v9, %v39_v11 }
  0xb8   :  { %v44_v13 = vsub.f32 %v42_v12, %v43_v10 }
  0xba   :  { %v45_v14 = vmul.f32 %v44_v13, %v44_v13 }
  0xbc   :  { %v47_v15 = vsel %vm46_vm3, %v45_v14, 0.0 }
  0xbd   :  { %48 = vadd.xlane.f32.xlu0 %v47_v15 }
 0x14a   :  { %v49_v16 = vpop.xlane.xlu0 %48 }
 0x14b   :  { %v50_v17 = vrot.slane %v49_v16, 4 }
 0x14d   :  { %v51_v18 = vadd.f32 %v50_v17, %v49_v16 }
 0x14f   :  { %v52_v19 = vrot.slane %v51_v18, 2 }
 0x151   :  { %v53_v20 = vadd.f32 %v52_v19, %v51_v18 }
 0x153   :  { %v54_v21 = vrot.slane %v53_v20, 1 }
 0x155   :  { %v55_v22 = vadd.f32 %v54_v21, %v53_v20 }
 0x157   :  { %74 = vpush %v55_v22 }
 0x188   :  { %s75_s28 = spop %74 }
 0x189   :  { %v57_v23 = vstv %s75_s28 }
 0x18a   :  { %58 = vst [vmem:[#allocation5] sm:$0xff] %v57_v23 }
 0x18b   :  { %113 = shalt.err (!%p110_p12)
}
 0x18c   :  { %s114_s4 = scalar_lea.hbm %s183_s3, 128 }
 0x18d   :  { %p115_p13 = scmp.ne.s32.totalorder %s183_s3, %s114_s4  ;;  %p118_p0 = scmp.lt.u32.totalorder %s114_s4, %s183_s3 }
 0x18f   :  { %p120_p1 = pnand %p118_p0, %p115_p13 }
 0x191   :  { %123 = shalt.err (!%p120_p1)
}
 0x192   :  { %68 = dma.vmem_to_hbm [thread:$0]  %s66_s27, 128, %s183_s3, [#allocation4]  }
 0x193   :  { %126 = dma.done.wait [#allocation4], 128  }
 0x194   :  { %127 = vsyncadd [#allocation4], 4294967168 }
 0x195   :  { %72 = vsyncpa [#allocation3], 1 }
 0x196   :  { %73 = vsyncpa [#allocation4], 1 }

</bundles_post_ra>
